<compile_context>
chip_gen: v5e
topology: v5e:2x2
jax: 0.10.0
libtpu: 0.0.40
codegen_flags: <defaults>
</compile_context>

<pallas_src>
import jax
import jax.numpy as jnp
from jax.experimental import pallas as pl
from jax.experimental.pallas import tpu as pltpu


def _round_up(n: int, m: int) -> int:
    return ((n + m - 1) // m) * m


def value_net_kernel(x_ref, w1_ref, b1_ref, w2_ref, b2_ref, w3_ref, b3_ref,
                     out_ref):
    """Fused 3-layer MLP for one lane-major batch tile.

    x_ref : (S, TB)   input tile, batch on lanes (f32 or bf16)
    w1_ref: (H, S)    layer-1 weight (transposed), f32, VMEM-resident
    b1_ref: (H, 1)    layer-1 bias column, f32
    w2_ref: (H, H)    layer-2 weight (transposed), f32, VMEM-resident
    b2_ref: (H, 1)    layer-2 bias column, f32
    w3_ref: (H, 1)    layer-3 weight column, f32
    b3_ref: (1, 1)    layer-3 scalar bias, SMEM
    out_ref: (1, TB)  lane-dense output row
    """
    x = x_ref[...].astype(jnp.float32)                       # (S, TB)
    w1 = w1_ref[...]                                         # (H, S) f32
    s, tb = x.shape
    h = w1.shape[0]

    # Layer 1: K = state_dim is tiny, so do S broadcast-FMAs on the VPU
    # instead of an MXU pass that would waste nearly the whole array.
    if s <= 8:
        h1 = jnp.broadcast_to(b1_ref[...], (h, tb))          # bias init
        for k in range(s):                                   # static unroll
            h1 = h1 + w1[:, k:k + 1] * x[k:k + 1, :]
    else:
        h1 = jnp.dot(w1, x, preferred_element_type=jnp.float32) + b1_ref[...]
    h1 = jnp.maximum(h1, 0.0)                                # (H, TB) f32

    # Layer 2: (H,H) @ (H,TB) on the MXU, f32 accumulation; N = TB fills lanes.
    h2 = jnp.dot(w2_ref[...], h1, preferred_element_type=jnp.float32)
    h2 = jnp.maximum(h2 + b2_ref[...], 0.0)                  # (H, TB) f32

    # Layer 3: Linear(hidden -> 1) as broadcast-mul + sublane reduce (XLU).
    # Result is already the lane-dense (1, TB) row -- no relayout needed.
    v = jnp.sum(h2 * w3_ref[...], axis=0, keepdims=True)     # (1, TB)
    out_ref[...] = (v + b3_ref[0, 0]).astype(out_ref.dtype)


def value_net_forward(x, params, *, tile_b: int = 4096, compute_dtype=None):
    """ValueNet forward: (B, state_dim) -> (B, 1) float32.

    tile_b       : target batch-tile size (lane axis).  Per-tile working set is
                   < 1 MiB even at 4096, so this is safe on all generations.
    compute_dtype: optional (e.g. jnp.bfloat16) cast of the streamed x only
                   (halves x HBM traffic on v6e/v7x; skip on v5e).  Weights and
                   accumulation stay f32.
    """
    B, S = x.shape
    H = params["w1"].shape[1]

    # Host-side layout prep (everything except x is tiny and DMA'd once):
    #   weights transposed so the kernel computes W^T @ X^T, biases as columns.
    w1_t = jnp.transpose(params["w1"]).astype(jnp.float32)    # (H, S)
    w2_t = jnp.transpose(params["w2"]).astype(jnp.float32)    # (H, H)
    w3_c = params["w3"].reshape(H, 1).astype(jnp.float32)     # (H, 1)
    b1 = params["b1"].reshape(H, 1).astype(jnp.float32)
    b2 = params["b2"].reshape(H, 1).astype(jnp.float32)
    b3 = params["b3"].reshape(1, 1).astype(jnp.float32)

    if compute_dtype is not None:
        x = x.astype(compute_dtype)      # stream operand only; weights stay f32
    x_t = jnp.transpose(x)                                    # (S, B)

    # Batch tiling along the lane axis.  Single full-extent tile for small B,
    # otherwise 128-aligned tiles.  No host-side padding: grid = cdiv(B, tb)
    # and Pallas masks the ragged last block (OOB input columns are garbage but
    # rows/columns are independent and their outputs are never stored).
    if B <= tile_b:
        tb = B
    else:
        tb = _round_up(tile_b, 128)
    num_tiles = (B + tb - 1) // tb

    # v7x has 2 TensorCores: split the batch grid across them explicitly
    # (plain "parallel" is a measured near-no-op).  Fall back to "parallel"
    # on single-core chips or single-tile / odd-tile launches.
    kind = jax.devices()[0].device_kind.lower()
    if "v7" in kind and num_tiles >= 2 and num_tiles % 2 == 0:
        dim_sem = (pltpu.CORE_PARALLEL,)
    else:
        dim_sem = ("parallel",)

    out_row = pl.pallas_call(
        value_net_kernel,
        out_shape=jax.ShapeDtypeStruct((1, B), jnp.float32),
        grid=(num_tiles,),
        in_specs=[
            pl.BlockSpec((S, tb), lambda i: (0, i)),   # x^T: streamed per tile
            pl.BlockSpec((H, S), lambda i: (0, 0)),    # w1^T: VMEM-resident
            pl.BlockSpec((H, 1), lambda i: (0, 0)),    # b1
            pl.BlockSpec((H, H), lambda i: (0, 0)),    # w2^T: VMEM-resident
            pl.BlockSpec((H, 1), lambda i: (0, 0)),    # b2
            pl.BlockSpec((H, 1), lambda i: (0, 0)),    # w3 column
            pl.BlockSpec(memory_space=pltpu.MemorySpace.SMEM),  # b3 scalar
        ],
        out_specs=pl.BlockSpec((1, tb), lambda i: (0, i)),
        compiler_params=pltpu.CompilerParams(dimension_semantics=dim_sem),
    )(x_t, w1_t, b1, w2_t, b2, w3_c, b3)

    # (1, B) -> (B, 1) is row-major identical, i.e. a free reshape.
    return out_row.reshape(B, 1)


def init_params(key, state_dim, hidden_dim):
    """Deterministic PyTorch-style Linear init: U(-1/sqrt(fan_in), 1/sqrt(fan_in))."""
    ks = jax.random.split(key, 6)

    def lin(kw, kb, fan_in, fan_out):
        bound = 1.0 / jnp.sqrt(fan_in)
        w = jax.random.uniform(kw, (fan_in, fan_out), jnp.float32, -bound, bound)
        b = jax.random.uniform(kb, (1, fan_out), jnp.float32, -bound, bound)
        return w, b

    w1, b1 = lin(ks[0], ks[1], state_dim, hidden_dim)
    w2, b2 = lin(ks[2], ks[3], hidden_dim, hidden_dim)
    w3, b3 = lin(ks[4], ks[5], hidden_dim, 1)
    return {"w1": w1, "b1": b1, "w2": w2, "b2": b2, "w3": w3, "b3": b3}


def value_net_ref(x, p):
    """Pure-JAX reference for correctness check."""
    h1 = jnp.maximum(x @ p["w1"] + p["b1"], 0.0)
    h2 = jnp.maximum(h1 @ p["w2"] + p["b2"], 0.0)
    return h2 @ p["w3"] + p["b3"]


if __name__ == "__main__":
    key = jax.random.PRNGKey(0)
    k_param, k_x, k_x2 = jax.random.split(key, 3)

    state_dim = 4
    hidden_dim = 32

    params = init_params(k_param, state_dim, hidden_dim)

    # Small, single-tile case (typical A2C batch), f32.
    x_small = jax.random.normal(k_x, (8, state_dim), dtype=jnp.float32)
    out_small = jax.block_until_ready(value_net_forward(x_small, params))
    ref_small = value_net_ref(x_small, params)
    assert out_small.shape == (8, 1), out_small.shape
    assert jnp.allclose(out_small, ref_small, atol=1e-5, rtol=1e-5)

    # Multi-tile case: exercises lane-axis batch tiling and the ragged
    # (non-divisible, unpadded) last block.
    x_big = jax.random.normal(k_x2, (300, state_dim), dtype=jnp.float32)
    out_big = jax.block_until_ready(value_net_forward(x_big, params, tile_b=128))
    ref_big = value_net_ref(x_big, params)
    assert out_big.shape == (300, 1), out_big.shape
    assert jnp.allclose(out_big, ref_big, atol=1e-5, rtol=1e-5)

    # bf16 streaming of x only (f32 weights + accumulation), loose tolerance.
    out_bf16 = jax.block_until_ready(
        value_net_forward(x_big, params, tile_b=128, compute_dtype=jnp.bfloat16))
    assert out_bf16.shape == (300, 1), out_bf16.shape
    assert jnp.allclose(out_bf16, ref_big, atol=1e-1, rtol=1e-1)

    print("KERNEL_OK")
</pallas_src>

<mosaic_0001>
module attributes {stable_mosaic.version = 11 : i64} {
  func.func @value_net_kernel(%arg0: i32, %arg1: memref<4x8xf32, #tpu.memory_space<vmem>>, %arg2: memref<32x4xf32, #tpu.memory_space<vmem>>, %arg3: memref<32x1xf32, #tpu.memory_space<vmem>>, %arg4: memref<32x32xf32, #tpu.memory_space<vmem>>, %arg5: memref<32x1xf32, #tpu.memory_space<vmem>>, %arg6: memref<32x1xf32, #tpu.memory_space<vmem>>, %arg7: memref<1x1xf32, #tpu.memory_space<smem>>, %arg8: memref<1x8xf32, #tpu.memory_space<vmem>>) attributes {dimension_semantics = [#tpu.dimension_semantics<parallel>], iteration_bounds = array<i64: 1>, scalar_prefetch = 0 : i64, scratch_operands = 0 : i64, tpu.core_type = #tpu.core_type<tc>, window_params = [{transform_indices = @transform_0, window_bounds = array<i64: 4, 8>}, {pipeline_mode = #tpu.pipeline_mode<synchronous>, transform_indices = @transform_1, window_bounds = array<i64: 32, 4>}, {pipeline_mode = #tpu.pipeline_mode<synchronous>, transform_indices = @transform_2, window_bounds = array<i64: 32, 1>}, {pipeline_mode = #tpu.pipeline_mode<synchronous>, transform_indices = @transform_3, window_bounds = array<i64: 32, 32>}, {pipeline_mode = #tpu.pipeline_mode<synchronous>, transform_indices = @transform_4, window_bounds = array<i64: 32, 1>}, {pipeline_mode = #tpu.pipeline_mode<synchronous>, transform_indices = @transform_5, window_bounds = array<i64: 32, 1>}, {transform_indices = @transform_6, window_bounds = array<i64: 1, 1>}, {transform_indices = @transform_7, window_bounds = array<i64: 1, 8>}]} {
    %c0 = arith.constant 0 : index
    %c0_0 = arith.constant 0 : index
    %0 = vector.load %arg1[%c0, %c0_0] : memref<4x8xf32, #tpu.memory_space<vmem>>, vector<4x8xf32>
    %c0_1 = arith.constant 0 : index
    %c0_2 = arith.constant 0 : index
    %1 = vector.load %arg2[%c0_1, %c0_2] : memref<32x4xf32, #tpu.memory_space<vmem>>, vector<32x4xf32>
    %c0_3 = arith.constant 0 : index
    %c0_4 = arith.constant 0 : index
    %2 = vector.load %arg3[%c0_3, %c0_4] : memref<32x1xf32, #tpu.memory_space<vmem>>, vector<32x1xf32>
    %3 = vector.shape_cast %2 : vector<32x1xf32> to vector<32x1xf32>
    %4 = vector.broadcast %3 : vector<32x1xf32> to vector<32x8xf32>
    %5 = vector.extract_strided_slice %1 {offsets = [0, 0], sizes = [32, 1], strides = [1, 1]} : vector<32x4xf32> to vector<32x1xf32>
    %6 = vector.extract_strided_slice %0 {offsets = [0, 0], sizes = [1, 8], strides = [1, 1]} : vector<4x8xf32> to vector<1x8xf32>
    %7 = vector.broadcast %5 : vector<32x1xf32> to vector<32x8xf32>
    %8 = vector.broadcast %6 : vector<1x8xf32> to vector<32x8xf32>
    %9 = arith.mulf %7, %8 : vector<32x8xf32>
    %10 = arith.addf %4, %9 : vector<32x8xf32>
    %11 = vector.extract_strided_slice %1 {offsets = [0, 1], sizes = [32, 1], strides = [1, 1]} : vector<32x4xf32> to vector<32x1xf32>
    %12 = vector.extract_strided_slice %0 {offsets = [1, 0], sizes = [1, 8], strides = [1, 1]} : vector<4x8xf32> to vector<1x8xf32>
    %13 = vector.broadcast %11 : vector<32x1xf32> to vector<32x8xf32>
    %14 = vector.broadcast %12 : vector<1x8xf32> to vector<32x8xf32>
    %15 = arith.mulf %13, %14 : vector<32x8xf32>
    %16 = arith.addf %10, %15 : vector<32x8xf32>
    %17 = vector.extract_strided_slice %1 {offsets = [0, 2], sizes = [32, 1], strides = [1, 1]} : vector<32x4xf32> to vector<32x1xf32>
    %18 = vector.extract_strided_slice %0 {offsets = [2, 0], sizes = [1, 8], strides = [1, 1]} : vector<4x8xf32> to vector<1x8xf32>
    %19 = vector.broadcast %17 : vector<32x1xf32> to vector<32x8xf32>
    %20 = vector.broadcast %18 : vector<1x8xf32> to vector<32x8xf32>
    %21 = arith.mulf %19, %20 : vector<32x8xf32>
    %22 = arith.addf %16, %21 : vector<32x8xf32>
    %23 = vector.extract_strided_slice %1 {offsets = [0, 3], sizes = [32, 1], strides = [1, 1]} : vector<32x4xf32> to vector<32x1xf32>
    %24 = vector.extract_strided_slice %0 {offsets = [3, 0], sizes = [1, 8], strides = [1, 1]} : vector<4x8xf32> to vector<1x8xf32>
    %25 = vector.broadcast %23 : vector<32x1xf32> to vector<32x8xf32>
    %26 = vector.broadcast %24 : vector<1x8xf32> to vector<32x8xf32>
    %27 = arith.mulf %25, %26 : vector<32x8xf32>
    %28 = arith.addf %22, %27 : vector<32x8xf32>
    %cst = arith.constant 0.000000e+00 : f32
    %29 = vector.broadcast %cst : f32 to vector<32x8xf32>
    %30 = arith.maximumf %28, %29 : vector<32x8xf32>
    %c0_5 = arith.constant 0 : index
    %c0_6 = arith.constant 0 : index
    %31 = vector.load %arg4[%c0_5, %c0_6] : memref<32x32xf32, #tpu.memory_space<vmem>>, vector<32x32xf32>
    %cst_7 = arith.constant dense<0.000000e+00> : vector<32x8xf32>
    %32 = tpu.matmul %31, %30, %cst_7 {dimension_numbers = #tpu.dot_dimension_numbers<[1], [0], [0], [1], [0, 0, 1, 1], [], []>} : vector<32x32xf32>, vector<32x8xf32>, vector<32x8xf32> -> vector<32x8xf32>
    %c0_8 = arith.constant 0 : index
    %c0_9 = arith.constant 0 : index
    %33 = vector.load %arg5[%c0_8, %c0_9] : memref<32x1xf32, #tpu.memory_space<vmem>>, vector<32x1xf32>
    %34 = vector.broadcast %33 : vector<32x1xf32> to vector<32x8xf32>
    %35 = arith.addf %32, %34 : vector<32x8xf32>
    %cst_10 = arith.constant 0.000000e+00 : f32
    %36 = vector.broadcast %cst_10 : f32 to vector<32x8xf32>
    %37 = arith.maximumf %35, %36 : vector<32x8xf32>
    %c0_11 = arith.constant 0 : index
    %c0_12 = arith.constant 0 : index
    %38 = vector.load %arg6[%c0_11, %c0_12] : memref<32x1xf32, #tpu.memory_space<vmem>>, vector<32x1xf32>
    %39 = vector.broadcast %38 : vector<32x1xf32> to vector<32x8xf32>
    %40 = arith.mulf %37, %39 : vector<32x8xf32>
    %cst_13 = arith.constant dense<0.000000e+00> : vector<8xf32>
    %41 = vector.multi_reduction <add>, %40, %cst_13 [0] : vector<32x8xf32> to vector<8xf32>
    %42 = vector.shape_cast %41 : vector<8xf32> to vector<1x8xf32>
    %c0_14 = arith.constant 0 : index
    %c0_15 = arith.constant 0 : index
    %43 = memref.load %arg7[%c0_14, %c0_15] : memref<1x1xf32, #tpu.memory_space<smem>>
    %44 = vector.broadcast %43 : f32 to vector<1x8xf32>
    %45 = arith.addf %42, %44 : vector<1x8xf32>
    %c0_16 = arith.constant 0 : index
    %c0_17 = arith.constant 0 : index
    %46 = vector.load %arg8[%c0_16, %c0_17] : memref<1x8xf32, #tpu.memory_space<vmem>>, vector<1x8xf32>
    tpu.vector_store %arg8[%c0_16, %c0_17], %45 {strides = array<i32>} : memref<1x8xf32, #tpu.memory_space<vmem>>, vector<1x8xf32>,
    return
  }
  func.func @transform_0(%arg0: i32) -> (i32, i32) {
    %c0_i32 = arith.constant 0 : i32
    %c0_i32_0 = arith.constant 0 : i32
    return %c0_i32, %arg0 : i32, i32
  }
  func.func @transform_1(%arg0: i32) -> (i32, i32) {
    %c0_i32 = arith.constant 0 : i32
    %c0_i32_0 = arith.constant 0 : i32
    %c0_i32_1 = arith.constant 0 : i32
    return %c0_i32, %c0_i32_0 : i32, i32
  }
  func.func @transform_2(%arg0: i32) -> (i32, i32) {
    %c0_i32 = arith.constant 0 : i32
    %c0_i32_0 = arith.constant 0 : i32
    %c0_i32_1 = arith.constant 0 : i32
    return %c0_i32, %c0_i32_0 : i32, i32
  }
  func.func @transform_3(%arg0: i32) -> (i32, i32) {
    %c0_i32 = arith.constant 0 : i32
    %c0_i32_0 = arith.constant 0 : i32
    %c0_i32_1 = arith.constant 0 : i32
    return %c0_i32, %c0_i32_0 : i32, i32
  }
  func.func @transform_4(%arg0: i32) -> (i32, i32) {
    %c0_i32 = arith.constant 0 : i32
    %c0_i32_0 = arith.constant 0 : i32
    %c0_i32_1 = arith.constant 0 : i32
    return %c0_i32, %c0_i32_0 : i32, i32
  }
  func.func @transform_5(%arg0: i32) -> (i32, i32) {
    %c0_i32 = arith.constant 0 : i32
    %c0_i32_0 = arith.constant 0 : i32
    %c0_i32_1 = arith.constant 0 : i32
    return %c0_i32, %c0_i32_0 : i32, i32
  }
  func.func @transform_6(%arg0: i32) -> (i32, i32) {
    %c0_i32 = arith.constant 0 : i32
    %c0_i32_0 = arith.constant 0 : i32
    %c0_i32_1 = arith.constant 0 : i32
    return %c0_i32, %c0_i32_0 : i32, i32
  }
  func.func @transform_7(%arg0: i32) -> (i32, i32) {
    %c0_i32 = arith.constant 0 : i32
    %c0_i32_0 = arith.constant 0 : i32
    return %c0_i32, %arg0 : i32, i32
  }
}

</mosaic_0001>

<bundles_post_ra>
// kernel: tpu_custom_call.1
= control target key start
LH: loop header
LB: loop body
LE: loop exit
PB: predicated region body
PF: predicated region fallthrough
CT: control target
= control target key end

     0   :  { %v369_v3 = vmov 0   ;;  %s496_s0 = inlined_call_operand.vmem [shape: f32[4,8], index: 0, kind: input, shape index: {}]   ;;  %s497_s1 = inlined_call_operand.vmem [shape: f32[32,4], index: 1, kind: input, shape index: {}]   ;;  %s498_s2 = inlined_call_operand.vmem [shape: f32[32,1], index: 2, kind: input, shape index: {}]   ;;  %s499_s3 = inlined_call_operand.vmem [shape: f32[32,32], index: 3, kind: input, shape index: {}]   ;;  %s500_s4 = inlined_call_operand.vmem [shape: f32[32,1], index: 4, kind: input, shape index: {}]   ;;  %s501_s5 = inlined_call_operand.vmem [shape: f32[32,1], index: 5, kind: input, shape index: {}]   ;;  %s502_s6 = inlined_call_operand.<no memory space> [shape: f32[1,1], index: 6, kind: input, shape index: {}]   ;;  %s503_s7 = inlined_call_operand.hbm [shape: f32[1,8], index: 7, kind: output, shape index: {}]  }
   0x1   :  { %v35_v0 = vld [vmem:[%s498_s2 + $0x10] sm:$0xff]  ;;  %v32_v1 = vld [vmem:[%s497_s1 + $0x18] sm:$0xff]  ;;  %326 = vset.pattern.permute.xlu2 %v369_v3  ;;  %324 = vset.pattern.permute.xlu1 %v369_v3 }
   0x2   :  { %v31_v2 = vld [vmem:[%s497_s1 + $0x10] sm:$0xff]  ;;  %323 = vset.pattern.permute.xlu0 %v369_v3  ;;  %49 = vperm.xlu2 %326, %v35_v0  }
   0x3   :  { %13 = vsyncpa [#allocation4], 0  ;;  %74 = vperm.xlu0 %323, %v32_v1   ;;  %69 = vperm.xlu1 %324, %v31_v2   ;;  %v30_v4 = vld [vmem:[%s497_s1 + $0x8] sm:$0xff]  ;;  %v36_v5 = vld [vmem:[%s498_s2 + $0x18] sm:$0xff]  ;;  %v370_v6 = vmov 1   ;;  %v371_v8 = vmov 2  }
   0x4   :  { %v34_v7 = vld [vmem:[%s498_s2 + $0x8] sm:$0xff]  ;;  %v29_v9 = vld [vmem:[%s497_s1] sm:$0xff]  ;;  %v372_v11 = vmov 3   ;;  %v171_v26 = vld [vmem:[%s500_s4 + $0x10] sm:$0xff]  ;;  %vm193_vm0 = vcmask 261120   ;;  %vm267_vm1 = vcmask 64512  }
   0x5   :  { %v33_v10 = vld [vmem:[%s498_s2] sm:$0xff]  ;;  %v170_v61 = vld [vmem:[%s500_s4 + $0x8] sm:$0xff]  ;;  %s373_s16 = smov [#allocation3]   ;;  %s293_s18 = sshll.u32 %s503_s7, 4  ;;  %vm284_vm2 = vcmask 57344   ;;  %s294_s18 = int_to_ptr.hbm [resolvable:$true] %s293_s18 }
   0x6   :  { %v28_v23 = vld [vmem:[%s496_s0] sm:$0xf]  ;;  %s291_s1 = sshll.u32 %s373_s16, 4  ;;  %s292_s1 = int_to_ptr.vmem [resolvable:$true] %s291_s1 }
   0x7   :  { %v443_v25 = vperm.slane %v28_v23, 0  ;;  %v102_v29 = vperm.slane %v28_v23, 1  ;;  %v127_v33 = vperm.slane %v28_v23, 2  ;;  %v152_v42 = vperm.slane %v28_v23, 3  ;;  %v239_v51 = vld [vmem:[%s501_s5] sm:$0xff] }
   0x8   :  { %v169_v62 = vld [vmem:[%s500_s4] sm:$0xff] }
   0xa   :  { %64 = vperm.xlu2 %326, %v30_v4  }
   0xb   :  { %54 = vperm.xlu0 %323, %v36_v5   ;;  %325 = vset.pattern.permute.xlu1 %v370_v6 }
   0xc   :  { %99 = vperm.xlu1 %325, %v32_v1  }
  0x12   :  { %44 = vperm.xlu2 %326, %v34_v7  }
  0x13   :  { %327 = vset.pattern.permute.xlu0 %v370_v6 }
  0x14   :  { %95 = vperm.xlu0 %327, %v31_v2   ;;  %328 = vset.pattern.permute.xlu1 %v371_v8 }
  0x15   :  { %124 = vperm.xlu1 %328, %v32_v1  }
  0x1a   :  { %330 = vset.pattern.permute.xlu2 %v370_v6 }
  0x1b   :  { %91 = vperm.xlu2 %330, %v30_v4  }
  0x1c   :  { %331 = vset.pattern.permute.xlu0 %v371_v8 }
  0x1d   :  { %120 = vperm.xlu0 %331, %v31_v2   ;;  %329 = vset.pattern.permute.xlu1 %v369_v3 }
  0x1e   :  { %59 = vperm.xlu1 %329, %v29_v9  }
  0x23   :  { %333 = vset.pattern.permute.xlu2 %v369_v3 }
  0x24   :  { %39 = vperm.xlu2 %333, %v33_v10  }
  0x25   :  { %336 = vset.pattern.permute.xlu0 %v372_v11 }
  0x26   :  { %145 = vperm.xlu0 %336, %v31_v2   ;;  %332 = vset.pattern.permute.xlu1 %v372_v11  ;;  %v242_v2 = vld [vmem:[%s501_s5 + $0x18] sm:$0xff] }
  0x27   :  { %149 = vperm.xlu1 %332, %v32_v1  }
  0x2c   :  { %335 = vset.pattern.permute.xlu2 %v371_v8 }
  0x2d   :  { %116 = vperm.xlu2 %335, %v30_v4  }
  0x2e   :  { %341 = vset.pattern.permute.xlu0 %v369_v3 }
  0x2f   :  { %334 = vset.pattern.permute.xlu1 %v370_v6  ;;  %180 = vperm.xlu0 %341, %v170_v61   ;;  %v240_v6 = vld [vmem:[%s501_s5 + $0x8] sm:$0xff] }
  0x30   :  { %87 = vperm.xlu1 %334, %v29_v9  }
  0x35   :  { %338 = vset.pattern.permute.xlu2 %v372_v11 }
  0x36   :  { %141 = vperm.xlu2 %338, %v30_v4   ;;  %v172_v4 = vld [vmem:[%s500_s4 + $0x18] sm:$0xff] }
  0x38   :  { %337 = vset.pattern.permute.xlu1 %v371_v8 }
  0x39   :  { %112 = vperm.xlu1 %337, %v29_v9  }
  0x3e   :  { %340 = vset.pattern.permute.xlu2 %v369_v3 }
  0x3f   :  { %175 = vperm.xlu2 %340, %v169_v62  }
  0x41   :  { %339 = vset.pattern.permute.xlu1 %v372_v11 }
  0x42   :  { %137 = vperm.xlu1 %339, %v29_v9  }
  0x47   :  { %190 = vperm.xlu2 %340, %v172_v4  }
  0x4a   :  { %342 = vset.pattern.permute.xlu1 %v369_v3  ;;  %v241_v3 = vld [vmem:[%s501_s5 + $0x10] sm:$0xff] }
  0x4b   :  { %185 = vperm.xlu1 %342, %v171_v26   ;;  %255 = vperm.xlu0 %341, %v241_v3  }
  0x4f   :  { %250 = vperm.xlu2 %340, %v240_v6  }
  0x53   :  { %245 = vperm.xlu1 %342, %v239_v51  }
  0x5b   :  { %260 = vperm.xlu1 %342, %v242_v2  }
  0x5c   :  { %v50_v12 = vpop.permute.xlu2 %49 }
  0x64   :  { %v65_v13 = vpop.permute.xlu2 %64 }
  0x65   :  { %v79_v31 = vmul.f32 %v443_v25, %v65_v13 }
  0x6c   :  { %v45_v14 = vpop.permute.xlu2 %44 }
  0x6d   :  { %v83_v37 = vadd.f32 %v79_v31, %v45_v14 }
  0x75   :  { %v70_v15 = vpop.permute.xlu1 %69  ;;  %v75_v16 = vpop.permute.xlu0 %74 }
  0x76   :  { %v92_v17 = vpop.permute.xlu2 %91  ;;  %v81_v28 = vmul.f32 %v443_v25, %v75_v16  ;;  %v80_v32 = vmul.f32 %v443_v25, %v70_v15 }
  0x77   :  { %v104_v38 = vmul.f32 %v102_v29, %v92_v17  ;;  %v165_v17 = vld [vmem:[%s499_s3] sm:$0xff] }
  0x78   :  { %v84_v39 = vadd.f32 %v80_v32, %v50_v12 }
  0x79   :  { %v108_v48 = vadd.f32 %v104_v38, %v83_v37 }
  0x7d   :  { %v55_v18 = vpop.permute.xlu0 %54 }
  0x7e   :  { %v100_v19 = vpop.permute.xlu1 %99  ;;  %v438_v20 = vpop.permute.xlu2 %39  ;;  %v85_v34 = vadd.f32 %v81_v28, %v55_v18  ;;  %v166_v18 = vld [vmem:[%s499_s3 + $0x8] sm:$0xff] }
  0x7f   :  { %v106_v35 = vmul.f32 %v102_v29, %v100_v19  ;;  %v167_v19 = vld [vmem:[%s499_s3 + $0x10] sm:$0xff] }
  0x81   :  { %v110_v44 = vadd.f32 %v106_v35, %v85_v34 }
  0x86   :  { %v96_v21 = vpop.permute.xlu0 %95 }
  0x87   :  { %v125_v22 = vpop.permute.xlu1 %124  ;;  %v117_v24 = vpop.permute.xlu2 %116  ;;  %v105_v36 = vmul.f32 %v102_v29, %v96_v21 }
  0x88   :  { %v131_v40 = vmul.f32 %v127_v33, %v125_v22  ;;  %v129_v46 = vmul.f32 %v127_v33, %v117_v24 }
  0x89   :  { %v109_v45 = vadd.f32 %v105_v36, %v84_v39 }
  0x8a   :  { %v135_v52 = vadd.f32 %v131_v40, %v110_v44  ;;  %v133_v56 = vadd.f32 %v129_v46, %v108_v48 }
  0x8f   :  { %v121_v27 = vpop.permute.xlu0 %120 }
  0x90   :  { %v60_v30 = vpop.permute.xlu1 %59  ;;  %v130_v41 = vmul.f32 %v127_v33, %v121_v27  ;;  %v142_v43 = vpop.permute.xlu2 %141 }
  0x91   :  { %v154_v54 = vmul.f32 %v152_v42, %v142_v43  ;;  %v78_v7 = vmul.f32 %v443_v25, %v60_v30 }
  0x92   :  { %v134_v53 = vadd.f32 %v130_v41, %v109_v45 }
  0x93   :  { %v158_v59 = vadd.f32 %v154_v54, %v133_v56  ;;  %v82_v9 = vadd.f32 %v78_v7, %v438_v20  ;;  %v168_v20 = vld [vmem:[%s499_s3 + $0x18] sm:$0xff] }
  0x95   :  { %v162_v0 = vmax.f32 %v158_v59, 0.0 }
  0x98   :  { %v146_v47 = vpop.permute.xlu0 %145 }
  0x99   :  { %v155_v49 = vmul.f32 %v152_v42, %v146_v47  ;;  %v150_v50 = vpop.permute.xlu1 %149  ;;  %v176_v21 = vpop.permute.xlu2 %175 }
  0x9a   :  { %v156_v55 = vmul.f32 %v152_v42, %v150_v50 }
  0x9b   :  { %v159_v57 = vadd.f32 %v155_v49, %v134_v53 }
  0x9c   :  { %v160_v58 = vadd.f32 %v156_v55, %v135_v52 }
  0x9d   :  { %v163_v63 = vmax.f32 %v159_v57, 0.0  ;;  %v282_v57 = vstv %s502_s6 }
  0x9e   :  { %v164_v60 = vmax.f32 %v160_v58, 0.0 }
  0xa0   :  { %218 = vmatpush.msra.mxu0 %v164_v60  ;;  %306 = vmatpush.msra.mxu1 %v164_v60 }
  0xa1   :  { %307 = vmatpush.msra.mxu2 %v164_v60  ;;  %308 = vmatpush.msra.mxu3 %v164_v60  ;;  %v191_v23 = vpop.permute.xlu2 %190  ;;  %v181_v24 = vpop.permute.xlu0 %180 }
  0xa2   :  { %v88_v1 = vpop.permute.xlu1 %87  ;;  %219 = vmatpush.msra.mxu0 %v163_v63  ;;  %309 = vmatpush.msra.mxu1 %v163_v63 }
  0xa3   :  { %310 = vmatpush.msra.mxu2 %v163_v63  ;;  %311 = vmatpush.msra.mxu3 %v163_v63  ;;  %v103_v8 = vmul.f32 %v102_v29, %v88_v1 }
  0xa4   :  { %220 = vmatpush.msra.mxu0 %v162_v0  ;;  %312 = vmatpush.msra.mxu1 %v162_v0 }
  0xa5   :  { %313 = vmatpush.msra.mxu2 %v162_v0  ;;  %314 = vmatpush.msra.mxu3 %v162_v0  ;;  %v107_v11 = vadd.f32 %v103_v8, %v82_v9 }
  0xa9   :  { %v251_v32 = vpop.permute.xlu2 %250 }
  0xab   :  { %v113_v5 = vpop.permute.xlu1 %112 }
  0xac   :  { %v128_v10 = vmul.f32 %v127_v33, %v113_v5 }
  0xae   :  { %v132_v13 = vadd.f32 %v128_v10, %v107_v11 }
  0xb4   :  { %v138_v12 = vpop.permute.xlu1 %137 }
  0xb5   :  { %v153_v14 = vmul.f32 %v152_v42, %v138_v12 }
  0xb7   :  { %v157_v15 = vadd.f32 %v153_v14, %v132_v13 }
  0xb9   :  { %v161_v16 = vmax.f32 %v157_v15, 0.0 }
  0xbb   :  { %221 = vmatpush.msra.mxu0 %v161_v16  ;;  %315 = vmatpush.msra.mxu1 %v161_v16 }
  0xbc   :  { %316 = vmatpush.msra.mxu2 %v161_v16  ;;  %317 = vmatpush.msra.mxu3 %v161_v16 }
  0xbd   :  { %302 = vmatmul.msk.f32.vlgmr.msra.gmra.mxu0 %vm193_vm0, %v165_v17  ;;  %303 = vmatmul.msk.f32.vlgmr.msra.gmra.mxu1 %vm193_vm0, %v166_v18  ;;  %v186_v22 = vpop.permute.xlu1 %185  ;;  %v256_v44 = vpop.permute.xlu0 %255 }
  0xbe   :  { %304 = vmatmul.msk.f32.vlgmr.msra.gmra.mxu2 %vm193_vm0, %v167_v19  ;;  %305 = vmatmul.msk.f32.vlgmr.msra.gmra.mxu3 %vm193_vm0, %v168_v20 }
  0xc5   :  { %v246_v27 = vpop.permute.xlu1 %245 }
  0xcd   :  { %v261_v43 = vpop.permute.xlu1 %260 }
 0x13a   :  { %v223_v25 = vpop.f32.mrf.mxu0  ;;  %v226_v26 = vpop.f32.mrf.mxu1 }
 0x13b   :  { %v224_v28 = vadd.f32 %v223_v25, %v176_v21  ;;  %v227_v29 = vadd.f32 %v226_v26, %v181_v24 }
 0x13d   :  { %v235_v30 = vmax.f32 %v224_v28, 0.0  ;;  %v236_v31 = vmax.f32 %v227_v29, 0.0 }
 0x13f   :  { %v263_v33 = vmul.f32 %v246_v27, %v235_v30  ;;  %v264_v34 = vmul.f32 %v251_v32, %v236_v31 }
 0x141   :  { %v229_v35 = vpop.f32.mrf.mxu2  ;;  %v232_v36 = vpop.f32.mrf.mxu3  ;;  %v268_v39 = vsel %vm267_vm1, %v263_v33, 0.0  ;;  %v269_v40 = vsel %vm267_vm1, %v264_v34, 0.0 }
 0x142   :  { %v230_v37 = vadd.f32 %v229_v35, %v186_v22  ;;  %v233_v38 = vadd.f32 %v232_v36, %v191_v23  ;;  %v270_v47 = vadd.f32 %v269_v40, %v268_v39 }
 0x144   :  { %v237_v41 = vmax.f32 %v230_v37, 0.0  ;;  %v238_v42 = vmax.f32 %v233_v38, 0.0 }
 0x146   :  { %v265_v45 = vmul.f32 %v256_v44, %v237_v41  ;;  %v266_v46 = vmul.f32 %v261_v43, %v238_v42 }
 0x148   :  { %v271_v48 = vsel %vm267_vm1, %v265_v45, 0.0  ;;  %v273_v50 = vsel %vm267_vm1, %v266_v46, 0.0 }
 0x149   :  { %v272_v49 = vadd.f32 %v271_v48, %v270_v47 }
 0x14b   :  { %v274_v51 = vadd.f32 %v273_v50, %v272_v49 }
 0x14d   :  { %v275_v52 = vrot.slane %v274_v51, 4 }
 0x14f   :  { %v276_v53 = vadd.f32 %v275_v52, %v274_v51 }
 0x151   :  { %v277_v54 = vrot.slane %v276_v53, 2 }
 0x153   :  { %v278_v55 = vadd.f32 %v277_v54, %v276_v53 }
 0x155   :  { %v279_v56 = vrot.slane %v278_v55, 1 }
 0x157   :  { %v280_v58 = vadd.f32 %v279_v56, %v278_v55 }
 0x159   :  { %v283_v59 = vadd.f32 %v282_v57, %v280_v58 }
 0x15b   :  { %285 = vst.msk [vmem:[#allocation3] sm:$0x1] %vm284_vm2, %v283_v59 }
 0x15c   :  { %296 = dma.vmem_to_hbm [thread:$0]  %s292_s1, 16, %s294_s18, [#allocation4]  }
 0x15d   :  { %367 = dma.done.wait [#allocation4], 16  }
 0x15e   :  { %368 = vsyncadd [#allocation4], 4294967280 }
 0x15f   :  { %301 = vsyncpa [#allocation4], 1 }

</bundles_post_ra>
